<compile_context>
chip_gen: v6e
topology: v6e:2x2x1
jax: 0.10.0
libtpu: 0.0.40
codegen_flags: <defaults>
</compile_context>

<pallas_src>
from functools import partial

import jax
import jax.numpy as jnp
from jax import lax
from jax.experimental import pallas as pl
from jax.experimental.pallas import tpu as pltpu


def _gelu_tanh(x):
    # F.gelu(approximate='tanh'): 0.5*x*(1 + tanh(sqrt(2/pi)*(x + 0.044715*x^3)))
    c = 0.7978845608028654  # sqrt(2/pi)
    return 0.5 * x * (1.0 + jnp.tanh(c * (x + 0.044715 * x * x * x)))


def _mlp_kernel(x_ref, w1_ref, w2t_ref, o_ref, acc_ref):
    # x_ref:   (TT, H)   token tile, native dtype
    # w1_ref:  (TF, H)   W1 tile (nn.Linear layout: out_features x in_features)
    # w2t_ref: (TF, H)   W2.T tile (pre-transposed in the wrapper)
    # o_ref:   (TT, H)   output tile (written once, on the last TF step)
    # acc_ref: (TT, H)   f32 accumulator scratch
    f = pl.program_id(1)

    @pl.when(f == 0)
    def _():
        acc_ref[...] = jnp.zeros_like(acc_ref)

    # First matmul: contract on hidden directly (no in-kernel W1 transpose),
    # native-dtype operands -> f32 accumulation on the MXU.
    h = lax.dot_general(
        x_ref[...], w1_ref[...],
        dimension_numbers=(((1,), (1,)), ((), ())),
        preferred_element_type=jnp.float32)                       # (TT, TF)

    # gelu(tanh) in f32.
    h = _gelu_tanh(h)

    # Second matmul: (TT, TF) @ (TF, H) -> accumulate into f32 scratch.
    # Cast the activation to the weight dtype so bf16 weights keep the bf16
    # MXU path; for f32 weights this is a no-op.
    acc_ref[...] += jnp.dot(h.astype(w2t_ref.dtype), w2t_ref[...],
                            preferred_element_type=jnp.float32)

    @pl.when(f == pl.num_programs(1) - 1)
    def _():
        o_ref[...] = acc_ref[...].astype(o_ref.dtype)


def _pick_tile(dim: int, preferred: int) -> int:
    """Largest multiple of 8 that divides `dim` and is <= preferred, else dim."""
    if dim <= preferred:
        return dim
    cand = (preferred // 8) * 8
    while cand >= 8:
        if dim % cand == 0:
            return cand
        cand -= 8
    return dim


def mlp_forward(x, w1, w2, *, token_tile: int | None = None,
                ffn_tile: int | None = None):
    """x: (..., hidden); w1: (intermediate, hidden); w2: (hidden, intermediate).

    Returns gelu_tanh(x @ w1.T) @ w2.T with shape (..., hidden).
    """
    *lead, hidden = x.shape
    intermediate = w1.shape[0]
    assert w1.shape == (intermediate, hidden)
    assert w2.shape == (hidden, intermediate)

    x2d = x.reshape(-1, hidden)
    n_tokens = x2d.shape[0]

    # Pre-transpose W2 once (outside the kernel) so the kernel never transposes.
    w2t = w2.T  # (intermediate, hidden)

    tt = token_tile or _pick_tile(n_tokens, 256)   # MXU-friendly M tile
    tf = ffn_tile or _pick_tile(intermediate, 512)
    assert n_tokens % tt == 0 and (tt % 8 == 0 or tt == n_tokens)
    assert intermediate % tf == 0 and (tf % 8 == 0 or tf == intermediate)

    grid = (n_tokens // tt, intermediate // tf)

    # Rough double-buffered VMEM footprint; only raise the scoped limit if needed.
    est = 2 * (tt * hidden * x2d.dtype.itemsize        # x tile
               + tf * hidden * w1.dtype.itemsize       # w1 tile
               + tf * hidden * w2t.dtype.itemsize      # w2t tile
               + tt * hidden * x2d.dtype.itemsize)     # out tile
    est += tt * hidden * 4                             # f32 accumulator
    cp_kwargs = dict(dimension_semantics=("parallel", "arbitrary"))
    if est > 24 * 1024 * 1024:
        cp_kwargs["vmem_limit_bytes"] = min(int(est * 1.5), 120 * 1024 * 1024)

    out = pl.pallas_call(
        _mlp_kernel,
        out_shape=jax.ShapeDtypeStruct((n_tokens, hidden), x.dtype),
        grid_spec=pltpu.PrefetchScalarGridSpec(
            num_scalar_prefetch=0,
            grid=grid,
            in_specs=[
                pl.BlockSpec((tt, hidden), lambda i, f: (i, 0)),   # x tile
                pl.BlockSpec((tf, hidden), lambda i, f: (f, 0)),   # w1 tile
                pl.BlockSpec((tf, hidden), lambda i, f: (f, 0)),   # w2.T tile
            ],
            out_specs=pl.BlockSpec((tt, hidden), lambda i, f: (i, 0)),
            scratch_shapes=[pltpu.VMEM((tt, hidden), jnp.float32)],
        ),
        compiler_params=pltpu.CompilerParams(**cp_kwargs),
    )(x2d, w1, w2t)

    return out.reshape(*lead, hidden)


if __name__ == "__main__":
    # Small config consistent with the module: hidden_size=32, intermediate_size=64.
    batch, seq, hidden, intermediate = 2, 8, 32, 64

    key = jax.random.PRNGKey(0)
    kx, k1, k2 = jax.random.split(key, 3)
    x = jax.random.normal(kx, (batch, seq, hidden), dtype=jnp.float32)
    # nn.Linear default init: U(-1/sqrt(fan_in), 1/sqrt(fan_in)).
    b1 = 1.0 / (hidden ** 0.5)
    b2 = 1.0 / (intermediate ** 0.5)
    w1 = jax.random.uniform(k1, (intermediate, hidden), dtype=jnp.float32,
                            minval=-b1, maxval=b1)
    w2 = jax.random.uniform(k2, (hidden, intermediate), dtype=jnp.float32,
                            minval=-b2, maxval=b2)

    # Small explicit tiles so the grid has >= 2 steps on both axes
    # (exercises the accumulator path and keeps both v7x TCs busy).
    out = mlp_forward(x, w1, w2, token_tile=8, ffn_tile=32)
    jax.block_until_ready(out)

    # Plain-JAX reference (same tanh-gelu formula as F.gelu(approximate='tanh')).
    h_ref = _gelu_tanh(jnp.einsum("bsh,fh->bsf", x, w1))
    out_ref = jnp.einsum("bsf,hf->bsh", h_ref, w2)
    assert out.shape == out_ref.shape
    assert jnp.allclose(out, out_ref, atol=1e-5, rtol=1e-5), \
        float(jnp.max(jnp.abs(out - out_ref)))

    # TODO(synk): ExpertParallel/ScaleGradient only rescale gradients in the
    # backward pass; the forward is an identity, so nothing to implement here.
    print("KERNEL_OK")
</pallas_src>

<mosaic_0001>
module attributes {stable_mosaic.version = 11 : i64} {
  func.func @_mlp_kernel(%arg0: i32, %arg1: i32, %arg2: memref<8x32xf32, #tpu.memory_space<vmem>>, %arg3: memref<32x32xf32, #tpu.memory_space<vmem>>, %arg4: memref<32x32xf32, #tpu.memory_space<vmem>>, %arg5: memref<8x32xf32, #tpu.memory_space<vmem>>, %arg6: memref<8x32xf32, #tpu.memory_space<vmem>>) attributes {dimension_semantics = [#tpu.dimension_semantics<parallel>, #tpu.dimension_semantics<arbitrary>], iteration_bounds = array<i64: 2, 2>, scalar_prefetch = 0 : i64, scratch_operands = 1 : i64, tpu.core_type = #tpu.core_type<tc>, window_params = [{transform_indices = @transform_0, window_bounds = array<i64: 8, 32>}, {transform_indices = @transform_1, window_bounds = array<i64: 32, 32>}, {transform_indices = @transform_2, window_bounds = array<i64: 32, 32>}, {transform_indices = @transform_3, window_bounds = array<i64: 8, 32>}]} {
    %c0_i32 = arith.constant 0 : i32
    %0 = arith.cmpi eq, %arg1, %c0_i32 : i32
    %1 = arith.extui %0 : i1 to i32
    %c0_i32_0 = arith.constant 0 : i32
    %2 = arith.cmpi ne, %1, %c0_i32_0 : i32
    scf.if %2 {
      %cst_16 = arith.constant 0.000000e+00 : f32
      %27 = vector.broadcast %cst_16 : f32 to vector<8x32xf32>
      %c0_17 = arith.constant 0 : index
      %c0_18 = arith.constant 0 : index
      %28 = vector.load %arg6[%c0_17, %c0_18] : memref<8x32xf32, #tpu.memory_space<vmem>>, vector<8x32xf32>
      tpu.vector_store %arg6[%c0_17, %c0_18], %27 {strides = array<i32>} : memref<8x32xf32, #tpu.memory_space<vmem>>, vector<8x32xf32>,
    } else {
    }
    %c0 = arith.constant 0 : index
    %c0_1 = arith.constant 0 : index
    %3 = vector.load %arg2[%c0, %c0_1] : memref<8x32xf32, #tpu.memory_space<vmem>>, vector<8x32xf32>
    %c0_2 = arith.constant 0 : index
    %c0_3 = arith.constant 0 : index
    %4 = vector.load %arg3[%c0_2, %c0_3] : memref<32x32xf32, #tpu.memory_space<vmem>>, vector<32x32xf32>
    %cst = arith.constant dense<0.000000e+00> : vector<8x32xf32>
    %5 = tpu.matmul %3, %4, %cst {dimension_numbers = #tpu.dot_dimension_numbers<[1], [1], [0], [0], [0, 0, 1, 0], [], []>} : vector<8x32xf32>, vector<32x32xf32>, vector<8x32xf32> -> vector<8x32xf32>
    %cst_4 = arith.constant 5.000000e-01 : f32
    %6 = vector.broadcast %cst_4 : f32 to vector<8x32xf32>
    %7 = arith.mulf %6, %5 : vector<8x32xf32>
    %cst_5 = arith.constant 4.471500e-02 : f32
    %8 = vector.broadcast %cst_5 : f32 to vector<8x32xf32>
    %9 = arith.mulf %8, %5 : vector<8x32xf32>
    %10 = arith.mulf %9, %5 : vector<8x32xf32>
    %11 = arith.mulf %10, %5 : vector<8x32xf32>
    %12 = arith.addf %5, %11 : vector<8x32xf32>
    %cst_6 = arith.constant 0.797884583 : f32
    %13 = vector.broadcast %cst_6 : f32 to vector<8x32xf32>
    %14 = arith.mulf %13, %12 : vector<8x32xf32>
    %15 = math.tanh %14 : vector<8x32xf32>
    %cst_7 = arith.constant 1.000000e+00 : f32
    %16 = vector.broadcast %cst_7 : f32 to vector<8x32xf32>
    %17 = arith.addf %16, %15 : vector<8x32xf32>
    %18 = arith.mulf %7, %17 : vector<8x32xf32>
    %c0_8 = arith.constant 0 : index
    %c0_9 = arith.constant 0 : index
    %19 = vector.load %arg6[%c0_8, %c0_9] : memref<8x32xf32, #tpu.memory_space<vmem>>, vector<8x32xf32>
    %c0_10 = arith.constant 0 : index
    %c0_11 = arith.constant 0 : index
    %20 = vector.load %arg4[%c0_10, %c0_11] : memref<32x32xf32, #tpu.memory_space<vmem>>, vector<32x32xf32>
    %cst_12 = arith.constant dense<0.000000e+00> : vector<8x32xf32>
    %21 = tpu.matmul %18, %20, %cst_12 {dimension_numbers = #tpu.dot_dimension_numbers<[1], [0], [0], [1], [0, 0, 1, 1], [], []>} : vector<8x32xf32>, vector<32x32xf32>, vector<8x32xf32> -> vector<8x32xf32>
    %22 = arith.addf %19, %21 : vector<8x32xf32>
    %c0_13 = arith.constant 0 : index
    %c0_14 = arith.constant 0 : index
    %23 = vector.load %arg6[%c0_13, %c0_14] : memref<8x32xf32, #tpu.memory_space<vmem>>, vector<8x32xf32>
    tpu.vector_store %arg6[%c0_13, %c0_14], %22 {strides = array<i32>} : memref<8x32xf32, #tpu.memory_space<vmem>>, vector<8x32xf32>,
    %c1_i32 = arith.constant 1 : i32
    %24 = arith.cmpi eq, %arg1, %c1_i32 : i32
    %25 = arith.extui %24 : i1 to i32
    %c0_i32_15 = arith.constant 0 : i32
    %26 = arith.cmpi ne, %25, %c0_i32_15 : i32
    scf.if %26 {
      %c0_16 = arith.constant 0 : index
      %c0_17 = arith.constant 0 : index
      %27 = vector.load %arg6[%c0_16, %c0_17] : memref<8x32xf32, #tpu.memory_space<vmem>>, vector<8x32xf32>
      %c0_18 = arith.constant 0 : index
      %c0_19 = arith.constant 0 : index
      %28 = vector.load %arg5[%c0_18, %c0_19] : memref<8x32xf32, #tpu.memory_space<vmem>>, vector<8x32xf32>
      tpu.vector_store %arg5[%c0_18, %c0_19], %27 {strides = array<i32>} : memref<8x32xf32, #tpu.memory_space<vmem>>, vector<8x32xf32>,
    } else {
    }
    return
  }
  func.func @transform_0(%arg0: i32, %arg1: i32) -> (i32, i32) {
    %c0_i32 = arith.constant 0 : i32
    %c0_i32_0 = arith.constant 0 : i32
    return %arg0, %c0_i32 : i32, i32
  }
  func.func @transform_1(%arg0: i32, %arg1: i32) -> (i32, i32) {
    %c0_i32 = arith.constant 0 : i32
    %c0_i32_0 = arith.constant 0 : i32
    return %arg1, %c0_i32 : i32, i32
  }
  func.func @transform_2(%arg0: i32, %arg1: i32) -> (i32, i32) {
    %c0_i32 = arith.constant 0 : i32
    %c0_i32_0 = arith.constant 0 : i32
    return %arg1, %c0_i32 : i32, i32
  }
  func.func @transform_3(%arg0: i32, %arg1: i32) -> (i32, i32) {
    %c0_i32 = arith.constant 0 : i32
    %c0_i32_0 = arith.constant 0 : i32
    return %arg0, %c0_i32 : i32, i32
  }
}

</mosaic_0001>

<bundles_post_ra>
// kernel: tpu_custom_call.1
= control target key start
LH: loop header
LB: loop body
LE: loop exit
PB: predicated region body
PF: predicated region fallthrough
CT: control target
= control target key end

     0   :  { %8 = vsyncpa [#allocation4], 0  ;;  %s924_s0 = inlined_call_operand.vmem [shape: f32[16,32], index: 0, kind: input, shape index: {}]   ;;  %s925_s1 = inlined_call_operand.vmem [shape: f32[64,32], index: 1, kind: input, shape index: {}]   ;;  %s926_s2 = inlined_call_operand.vmem [shape: f32[64,32], index: 2, kind: input, shape index: {}]   ;;  %s927_s3 = inlined_call_operand.hbm [shape: f32[16,32], index: 3, kind: output, shape index: {}]  }
   0x1   :  { %10 = vsyncpa [#allocation4 + $0x1], 0  ;;  %s771_s12 = smov 0   ;;  %s773_s13 = smov 0  }
   0x2   :  { %s775_s14 = smov 0   ;;  %s777_s15 = smov 0  }
   0x3   :  { %s779_s16 = smov 0   ;;  %s781_s17 = smov 0  }
   0x4   :  { %s783_s18 = smov 0   ;;  %s785_s19 = smov 0  }
   0x5 LB: > { %s522_s20 = sadd.s32 4294967295, %s745_s19   ;;  %s523_s21 = sadd.s32 4294967294, %s745_s19   ;;  %s745_s19 = sphi %s785_s19, %s16_s19   ;;  %s741_s18 = sphi %s783_s18, %s941_s18   ;;  %s737_s17 = sphi %s781_s17, %s940_s17   ;;  %s733_s16 = sphi %s779_s16, %s939_s16   ;;  %s729_s15 = sphi %s777_s15, %s938_s15   ;;  %s725_s14 = sphi %s775_s14, %s937_s14   ;;  %s721_s13 = sphi %s773_s13, %s936_s13   ;;  %s717_s12 = sphi %s771_s12, %s935_s12  }
   0x6   : > { %s25_s22 = sadd.s32 1, %s737_s17  ;;  %s28_s23 = sadd.s32 1, %s741_s18 }
   0x7   : > { %p26_p0 = scmp.ge.s32.totalorder %s25_s22, 2  ;;  %p123_p1 = scmp.ne.s32.totalorder %s725_s14, %s721_s13 }
   0x8   : > { %p124_p2 = scmp.eq.s32.totalorder %s522_s20, 3  ;;  %p129_p4 = scmp.ne.s32.totalorder %s721_s13, %s717_s12 }
   0x9   : > { %s943_s22 = smov (%p26_p0, %s25_s22), 0  ;;  %s945_s23 = smov (!%p26_p0, %s28_s23), %s741_s18 }
   0xa   : > { %p820_p3 = por %p124_p2, %p123_p1  ;;  %p30_p5 = scmp.ge.s32.totalorder %s945_s23, 2 }
   0xb   : > { %p130_p6 = scmp.eq.s32.totalorder %s523_s21, 3  ;;  %p526_p7 = scmp.ge.s32.totalorder %s745_s19, 1 }
   0xc   : > { %p173_p8 = scmp.lt.s32.totalorder %s745_s19, 5  ;;  %s947_s23 = smov (%p30_p5, %s945_s23), 0 }
   0xd   : > { %931 = sst [smem:[#allocation6_spill]] %s947_s23  ;;  %p830_p9 = por %p130_p6, %p129_p4 }
   0xe   : > { %p174_p10 = pnand %p526_p7, %p173_p8  ;;  %s110_s26 = ssub.s32 %s741_s18, %s947_s23 }
   0xf   : > { %s113_s27 = sadd.s32 1, %s725_s14  ;;  %p111_p11 = scmp.eq.s32.totalorder %s110_s26, 0 }
  0x10   : > { %177 = sbr.rel (%p174_p10) target bundleno = 495 (0x1ef), region = 32  ;;  %s928_s29 = sand.u32 (!%p174_p10), 1, %s721_s13  }
  0x11   : > { %s838_s28 = scalar_select %p111_p11, %s725_s14, %s113_s27  }
  0x12   : > { %p206_p12 = scmp.lt.s32.totalorder (!%p174_p10), %s733_s16, 1  ;;  %s844_s30 = sshll.u32 (!%p174_p10), %s928_s29, 3 }
  0x13   : > { %s529_s4 = sshll.u32 (!%p174_p10), %s729_s15, 2  ;;  %s205_s23 = scalar_lea.vmem (!%p174_p10), [#allocation3], %s844_s30 }
  0x14   : > { %p211_p13 = scmp.lt.s32.totalorder (!%p174_p10), %s529_s4, 7  ;;  %p533_p0 = scmp.ne.s32.totalorder (!%p174_p10), %s729_s15, 0 }
  0x15   : > { %s207_s5 = scalar_select %p206_p12, %s733_s16, 1 }
  0x16   : > { %s949_s4 = smov (!%p211_p13, %s529_s4), 7  ;;  %225 = sbr.rel (%p533_p0) target bundleno = 29 (0x1d), region = 36 }
  0x17   : > { %s528_s6 = sshll.u32 %s207_s5, 3  ;;  %s530_s10 = sshll.u32 %s949_s4, 3 }
  0x18   : > { %s209_s9 = scalar_lea.vmem %s924_s0, %s528_s6  ;;  %s214_s21 = scalar_lea.vmem %s925_s1, %s530_s10 }
  0x19   : > { %s857_s29 = scalar_lea.vmem %s926_s2, %s530_s10 }
  0x1b   : > { %vm226_vm0 = vcmask 261120   ;;  %v747_v0 = vmov 0.0  }
  0x1c   : > { %227 = vst.msk [vmem:[#allocation2] sm:$0xff] %vm226_vm0, %v747_v0 }
  0x1d PF: > { %v232_v1 = vld [vmem:[%s214_s21 + $0x18] sm:$0xff]  ;;  %vm233_vm1 = vcmask 261120   ;;  %v748_v2 = vmov 0.0   ;;  %vm749_vm2 = vmmov 0   ;;  %v231_v3 = vld [vmem:[%s214_s21 + $0x10] sm:$0xff]  ;;  %v230_v4 = vld [vmem:[%s214_s21 + $0x8] sm:$0xff] }
  0x1e   : > { %555 = vmatprep.subr.mxu0 %v748_v2  ;;  %563 = vmatprep.mubr.msk.f32.mxu0 %vm749_vm2, %v748_v2  ;;  %v229_v5 = vld [vmem:[%s214_s21] sm:$0xff]  ;;  %v332_v7 = vld [vmem:[%s857_s29 + $0x18] sm:$0xff]  ;;  %v331_v8 = vld [vmem:[%s857_s29 + $0x10] sm:$0xff]  ;;  %p540_p1 = scmp.ne.s32.totalorder %s729_s15, 1 }
  0x1f   : > { %556 = vmatpush3.xpose.msk.msra.mxu0 %vm233_vm1, %v232_v1  ;;  %566 = vmatprep.subr.mxu1 %v748_v2  ;;  %v228_v6 = vld [vmem:[%s209_s9] sm:$0xff]  ;;  %v330_v9 = vld [vmem:[%s857_s29 + $0x8] sm:$0xff] }
  0x20   : > { %557 = vmatprep.subr.mxu0 %v748_v2  ;;  %574 = vmatprep.mubr.msk.f32.mxu1 %vm749_vm2, %v748_v2  ;;  %v329_v10 = vld [vmem:[%s857_s29] sm:$0xff] }
  0x21   : > { %567 = vmatpush3.msra.mxu1 %v332_v7 }
  0x22   : > { %568 = vmatprep.subr.mxu1 %v748_v2 }
  0x23   : > { %558 = vmatpush3.xpose.msk.msra.mxu0 %vm233_vm1, %v231_v3  ;;  %569 = vmatpush3.msra.mxu1 %v331_v8  ;;  %v328_v22 = vld [vmem:[#allocation2] sm:$0xff] }
  0x24   : > { %559 = vmatprep.subr.mxu0 %v748_v2  ;;  %570 = vmatprep.subr.mxu1 %v748_v2 }
  0x25   : > { %571 = vmatpush3.msra.mxu1 %v330_v9 }
  0x26   : > { %572 = vmatprep.subr.mxu1 %v748_v2 }
  0x27   : > { %560 = vmatpush3.xpose.msk.msra.mxu0 %vm233_vm1, %v230_v4  ;;  %573 = vmatpush3.msra.mxu1 %v329_v10 }
  0x28   : > { %561 = vmatprep.subr.mxu0 %v748_v2 }
  0x2b   : > { %562 = vmatpush3.xpose.msk.msra.mxu0 %vm233_vm1, %v229_v5 }
  0x2e   : > { %564 = vmatmul.mubr.msk.f32.vlgmr.msra.gmra.mxu0 %vm233_vm1, %v228_v6 }
  0xee   : > { %v315_v11 = vpop.f32.mrf.mxu0 }
  0xef   : > { %v320_v12 = vmul.f32 0.044715, %v315_v11  ;;  %v319_v19 = vmul.f32 0.5, %v315_v11 }
  0xf0   : > { %v565_v13 = vpop.f32.mrf.mxu0 }
  0xf1   : > { %v321_v14 = vmul.f32 %v320_v12, %v315_v11 }
  0xf3   : > { %v322_v15 = vmul.f32 %v321_v14, %v315_v11 }
  0xf5   : > { %v323_v16 = vadd.f32 %v322_v15, %v315_v11 }
  0xf7   : > { %v324_v17 = vmul.f32 0.7978846, %v323_v16 }
  0xf9   : > { %651 = vtanh.f32 %v324_v17 }
 0x106   : > { %v652_v18 = vpop.eup %651 }
 0x107   : > { %v326_v20 = vadd.f32 1.0, %v652_v18 }
 0x109   : > { %v327_v21 = vmul.f32 %v326_v20, %v319_v19 }
 0x10b   : > { %575 = vmatmul.mubr.msk.f32.vlgmr.msra.gmra.mxu1 %vm233_vm1, %v327_v21 }
 0x1ca   : > { %411 = sbr.rel (%p540_p1) target bundleno = 471 (0x1d7), region = 40 }
 0x1cb   : > { %v402_v23 = vpop.f32.mrf.mxu1 }
 0x1cc   : > { %v406_v24 = vadd.f32 %v402_v23, %v328_v22 }
 0x1cd   : > { %v576_v25 = vpop.f32.mrf.mxu1 }
 0x1ce   : > { %407 = vst.msk [vmem:[#allocation2] sm:$0xff] %vm233_vm1, %v406_v24 }
 0x1d5   : > { %v412_v26 = vld [vmem:[#allocation2] sm:$0xff] }
 0x1d6   : > { %413 = vst.msk [vmem:[%s205_s23] sm:$0xff] %vm233_vm1, %v412_v26 }
 0x1d7 PF: > { %s542_s29 = sshll.u32 %s733_s16, 7  ;;  %s428_s7 = sshll.u32 %s205_s23, 4  ;;  %s429_s7 = int_to_ptr.vmem [resolvable:$true] %s428_s7 }
 0x1d8   : > { %s426_s6 = scalar_lea.hbm %s927_s3, %s542_s29  ;;  %s933_s15 = sand.u32 1, %s721_s13  }
 0x1d9   : > { %s415_s8 = scalar_lea.sflag [#allocation4], %s933_s15  ;;  %s653_s9 = scalar_lea.vmem %s429_s7, 128 }
 0x1da   : > { %p654_p2 = scmp.ne.s32.totalorder %s429_s7, %s653_s9  ;;  %s750_s10 = smov [#allocation3]  }
 0x1db   : > { %s657_s11 = sshll.u32 %s750_s10, 4  ;;  %s658_s11 = int_to_ptr.vmem [resolvable:$false] %s657_s11 }
 0x1dc   : > { %p655_p4 = pnand %p654_p2, %p820_p3  ;;  %s659_s20 = scalar_lea.vmem %s658_s11, 256 }
 0x1dd   : > { %p660_p6 = scmp.lt.s32.totalorder %s429_s7, %s658_s11  ;;  %p661_p7 = scmp.lt.s32.totalorder %s659_s20, %s653_s9 }
 0x1de   : > { %p656_p5 = pneg %p655_p4 }
 0x1df   : > { %p662_p8 = por %p661_p7, %p660_p6 }
 0x1e1   : > { %p663_p10 = pnand %p662_p8, %p656_p5 }
 0x1e3   : > { %666 = shalt.err (!%p663_p10)
}
 0x1e4   : > { %s667_s16 = scalar_lea.hbm %s426_s6, 128  ;;  %s671_s21 = scalar_lea.hbm %s927_s3, 256 }
 0x1e5   : > { %p668_p11 = scmp.ne.s32.totalorder %s426_s6, %s667_s16  ;;  %p672_p0 = scmp.lt.s32.totalorder %s426_s6, %s927_s3 }
 0x1e6   : > { %p673_p1 = scmp.lt.s32.totalorder %s671_s21, %s667_s16 }
 0x1e7   : > { %p669_p12 = pnand %p668_p11, %p820_p3 }
 0x1e8   : > { %p674_p2 = por %p673_p1, %p672_p0 }
 0x1e9   : > { %p670_p13 = pneg %p669_p12 }
 0x1eb   : > { %p675_p4 = pnand %p674_p2, %p670_p13 }
 0x1ed   : > { %678 = shalt.err (!%p675_p4)
}
 0x1ee   : > { %577 = dma.vmem_to_hbm [thread:$0]  (%p820_p3), %s429_s7, 128, %s426_s6, %s415_s8  }
 0x1ef PF: > { %p583_p5 = scmp.ge.s32.totalorder %s745_s19, 2  ;;  %s440_s29 = sand.u32 1, %s717_s12  }
 0x1f0   : > { %s441_s4 = scalar_lea.sflag [#allocation4], %s440_s29 }
 0x1f1   : > { %p580_p6 = pnand %p583_p5, %p830_p9 }
 0x1f3   : > { %p581_p7 = pneg %p580_p6 }
 0x1f5   : > { %712 = dma.done.wait (%p581_p7), %s441_s4, 128  }
 0x1f6   : > { %714 = vsyncadd (%p581_p7), %s441_s4, 4294967168  ;;  %s16_s19 = sadd.s32 1, %s745_s19   ;;  %s934_s24 = sld [smem:[#allocation6_spill]] }
 0x1f7   : > { %p13_p8 = scmp.ge.s32.totalorder %s16_s19, 6   ;;  %s935_s12 = smov %s721_s13 }
 0x1f8   : > { %s936_s13 = smov %s725_s14  ;;  %s937_s14 = smov %s838_s28 }
 0x1f9   : > { %s938_s15 = smov %s737_s17  ;;  %s939_s16 = smov %s741_s18 }
 0x1fa   : > { %s940_s17 = smov %s943_s22  ;;  %15 = sbr.rel (!%p13_p8) target bundleno = 5 (0x5), region = 81 }
 0x1fc   : > { %s941_s18 = smov %s934_s24 }
 0x1ff   :  { %446 = vsyncpa [#allocation4], 1 }
 0x200   :  { %448 = vsyncpa [#allocation4 + $0x1], 1 }

</bundles_post_ra>
